<compile_context>
chip_gen: v6e
topology: v6e:2x2x1
jax: 0.10.0
libtpu: 0.0.40
codegen_flags: <defaults>
</compile_context>

<pallas_src>
import jax
import jax.numpy as jnp
from jax.experimental import pallas as pl
from jax.experimental.pallas import tpu as pltpu

# config.dc_threshold from the GCT codebase (deterministic, in-script).
DC_THRESHOLD = 0.5


def _dcgt_kernel(l_pred_ref, r_pred_ref, l_flaw_ref, r_flaw_ref,
                 l_gt_ref, r_gt_ref, both_bad_ref):
    thr = jnp.float32(DC_THRESHOLD)

    l_tmp = l_flaw_ref[...]          # (n_b, 1, T)
    r_tmp = r_flaw_ref[...]          # (n_b, 1, T)

    l_bad = l_tmp > thr
    r_bad = r_tmp > thr
    both_bad_ref[...] = jnp.logical_and(l_bad, r_bad).astype(jnp.float32)

    # handled = tmp * (tmp <= thr) + (tmp > thr)  ==  where(tmp > thr, 1, tmp)
    l_handled = jnp.where(l_bad, jnp.float32(1.0), l_tmp)   # (n_b, 1, T)
    r_handled = jnp.where(r_bad, jnp.float32(1.0), r_tmp)   # (n_b, 1, T)

    l_pred = l_pred_ref[...]         # (n_b, C, T)
    r_pred = r_pred_ref[...]         # (n_b, C, T)

    # l_mask = (r_handled >= l_handled); l_gt = l_mask*l_pred + (1-l_mask)*r_pred
    l_gt_ref[...] = jnp.where(r_handled >= l_handled, l_pred, r_pred)
    # r_mask = (l_handled >= r_handled); r_gt = r_mask*r_pred + (1-r_mask)*l_pred
    r_gt_ref[...] = jnp.where(l_handled >= r_handled, r_pred, l_pred)


def _choose_tiling(N, C, HW, *,
                   vmem_budget_bytes=28 * 1024 * 1024,
                   max_lane_tile=32768,
                   max_batch_tile=None,
                   target_step_bytes=4 * 1024 * 1024):
    """Pick (lane_tile, batch_tile, vmem_limit_bytes).

    VMEM per grid step (double-buffered, f32, Mosaic sublane padding):
      4 pred-shaped blocks of (n_b, C_pad, T)  [2 in + 2 out], C_pad = ceil(C/8)*8
      3 flaw-shaped blocks of (n_b, 8, T)      [2 in + 1 out]
      => bytes ~= 2 * 4 * T * n_b * (4*C_pad + 24)
    The budget is conservative for v5e/v6e and leaves headroom under v7x's
    64 MiB physical VMEM per TensorCore.
    """
    c_pad = -(-C // 8) * 8
    vmem_per_nb_per_lane = 2 * 4 * (4 * c_pad + 3 * 8)

    # Lane tile: largest multiple of 128 that fits the budget with n_b = 1,
    # capped by max_lane_tile.  If one tile can cover the whole row, use the
    # exact (un-padded) row length so the block equals the full array dim.
    t_cap = min(vmem_budget_bytes // vmem_per_nb_per_lane, max_lane_tile)
    if HW <= t_cap or HW <= 128:
        t_hw = HW
    else:
        t_hw = max(128, (t_cap // 128) * 128)

    # Batch packing: amortize per-step overhead when the payload is small.
    hbm_per_nb = 4 * t_hw * (4 * C + 3)            # actual HBM bytes / batch el
    vmem_per_nb = vmem_per_nb_per_lane * t_hw
    n_b = min(N,
              -(-target_step_bytes // hbm_per_nb),
              max(1, vmem_budget_bytes // vmem_per_nb))
    if max_batch_tile is not None:
        n_b = min(n_b, max_batch_tile)
    n_b = max(1, n_b)

    vmem_used = n_b * vmem_per_nb
    vmem_limit = int(min(48 * 1024 * 1024,
                         max(32 * 1024 * 1024, vmem_used + 8 * 1024 * 1024)))
    return t_hw, n_b, vmem_limit


def dcgt_generator(l_pred, r_pred, l_handled_flawmap, r_handled_flawmap,
                   **tiling_overrides):
    """Pallas implementation of DCGTGenerator.forward.

    Args (all float32, NCHW):
      l_pred, r_pred:                       (N, C, H, W)
      l_handled_flawmap, r_handled_flawmap: (N, 1, H, W)
    Returns:
      (l_dc_gt, r_dc_gt, both_bad, both_bad) matching PyTorch semantics.
    NOTE: the in-place mutation of the flawmaps in the PyTorch module is not
    reproduced (JAX is functional); only the returned values match.
    """
    N, C, H, W = l_pred.shape
    HW = H * W

    lp = l_pred.reshape(N, C, HW)
    rp = r_pred.reshape(N, C, HW)
    lf = l_handled_flawmap.reshape(N, 1, HW)
    rf = r_handled_flawmap.reshape(N, 1, HW)

    t_hw, n_b, vmem_limit = _choose_tiling(N, C, HW, **tiling_overrides)

    grid = (pl.cdiv(N, n_b), pl.cdiv(HW, t_hw))
    pred_spec = pl.BlockSpec((n_b, C, t_hw), lambda b, t: (b, 0, t))
    flaw_spec = pl.BlockSpec((n_b, 1, t_hw), lambda b, t: (b, 0, t))

    l_gt, r_gt, both_bad = pl.pallas_call(
        _dcgt_kernel,
        out_shape=(
            jax.ShapeDtypeStruct((N, C, HW), jnp.float32),
            jax.ShapeDtypeStruct((N, C, HW), jnp.float32),
            jax.ShapeDtypeStruct((N, 1, HW), jnp.float32),
        ),
        grid=grid,
        in_specs=[pred_spec, pred_spec, flaw_spec, flaw_spec],
        out_specs=[pred_spec, pred_spec, flaw_spec],
        compiler_params=pltpu.CompilerParams(
            dimension_semantics=("parallel", "parallel"),
            vmem_limit_bytes=vmem_limit),
    )(lp, rp, lf, rf)

    l_gt = l_gt.reshape(N, C, H, W)
    r_gt = r_gt.reshape(N, C, H, W)
    both_bad = both_bad.reshape(N, 1, H, W)
    return l_gt, r_gt, both_bad, both_bad


def _reference(l_pred, r_pred, l_flaw, r_flaw, thr=DC_THRESHOLD):
    l_tmp, r_tmp = l_flaw, r_flaw
    l_bad = l_tmp > thr
    r_bad = r_tmp > thr
    both_bad = (l_bad & r_bad).astype(jnp.float32)
    l_h = l_tmp * (l_tmp <= thr) + l_bad.astype(jnp.float32)
    r_h = r_tmp * (r_tmp <= thr) + r_bad.astype(jnp.float32)
    l_mask = (r_h >= l_h).astype(jnp.float32)
    r_mask = (l_h >= r_h).astype(jnp.float32)
    l_gt = l_mask * l_pred + (1 - l_mask) * r_pred
    r_gt = r_mask * r_pred + (1 - r_mask) * l_pred
    return l_gt, r_gt, both_bad, both_bad


def _run_case(key, N, C, H, W, **tiling_overrides):
    k1, k2, k3, k4 = jax.random.split(key, 4)
    l_pred = jax.random.uniform(k1, (N, C, H, W), dtype=jnp.float32)
    r_pred = jax.random.uniform(k2, (N, C, H, W), dtype=jnp.float32)
    l_flaw = jax.random.uniform(k3, (N, 1, H, W), dtype=jnp.float32)
    r_flaw = jax.random.uniform(k4, (N, 1, H, W), dtype=jnp.float32)

    outs = dcgt_generator(l_pred, r_pred, l_flaw, r_flaw, **tiling_overrides)
    outs = jax.block_until_ready(outs)

    refs = _reference(l_pred, r_pred, l_flaw, r_flaw)
    for o, r in zip(outs, refs):
        assert o.shape == r.shape and o.dtype == r.dtype
        assert jnp.allclose(o, r, atol=1e-6), "mismatch vs reference"


if __name__ == "__main__":
    key = jax.random.PRNGKey(0)
    k_a, k_b, k_c = jax.random.split(key, 3)

    # Primary small case: whole row fits in one lane tile, batch packed.
    _run_case(k_a, N=2, C=4, H=16, W=16)
    # Non-multiple-of-128 spatial size: single full-width (exact) tile.
    _run_case(k_b, N=2, C=4, H=15, W=15)
    # Force small tiles to exercise ragged lane tiles + ragged batch block
    # (Pallas-masked edge stores, no wrapper pad/slice).
    _run_case(k_c, N=3, C=4, H=15, W=15, max_lane_tile=128, max_batch_tile=2)

    print("KERNEL_OK")
</pallas_src>

<mosaic_0001>
module attributes {stable_mosaic.version = 11 : i64} {
  func.func @_dcgt_kernel(%arg0: i32, %arg1: i32, %arg2: memref<2x4x256xf32, #tpu.memory_space<vmem>>, %arg3: memref<2x4x256xf32, #tpu.memory_space<vmem>>, %arg4: memref<2x1x256xf32, #tpu.memory_space<vmem>>, %arg5: memref<2x1x256xf32, #tpu.memory_space<vmem>>, %arg6: memref<2x4x256xf32, #tpu.memory_space<vmem>>, %arg7: memref<2x4x256xf32, #tpu.memory_space<vmem>>, %arg8: memref<2x1x256xf32, #tpu.memory_space<vmem>>) attributes {dimension_semantics = [#tpu.dimension_semantics<parallel>, #tpu.dimension_semantics<parallel>], iteration_bounds = array<i64: 1, 1>, scalar_prefetch = 0 : i64, scratch_operands = 0 : i64, tpu.core_type = #tpu.core_type<tc>, window_params = [{transform_indices = @transform_0, window_bounds = array<i64: 2, 4, 256>}, {transform_indices = @transform_1, window_bounds = array<i64: 2, 4, 256>}, {transform_indices = @transform_2, window_bounds = array<i64: 2, 1, 256>}, {transform_indices = @transform_3, window_bounds = array<i64: 2, 1, 256>}, {transform_indices = @transform_4, window_bounds = array<i64: 2, 4, 256>}, {transform_indices = @transform_5, window_bounds = array<i64: 2, 4, 256>}, {transform_indices = @transform_6, window_bounds = array<i64: 2, 1, 256>}]} {
    %c0 = arith.constant 0 : index
    %c0_0 = arith.constant 0 : index
    %c0_1 = arith.constant 0 : index
    %0 = vector.load %arg4[%c0, %c0_0, %c0_1] : memref<2x1x256xf32, #tpu.memory_space<vmem>>, vector<2x1x256xf32>
    %c0_2 = arith.constant 0 : index
    %c0_3 = arith.constant 0 : index
    %c0_4 = arith.constant 0 : index
    %1 = vector.load %arg5[%c0_2, %c0_3, %c0_4] : memref<2x1x256xf32, #tpu.memory_space<vmem>>, vector<2x1x256xf32>
    %cst = arith.constant 5.000000e-01 : f32
    %2 = vector.broadcast %cst : f32 to vector<2x1x256xf32>
    %3 = arith.cmpf ogt, %0, %2 : vector<2x1x256xf32>
    %cst_5 = arith.constant 5.000000e-01 : f32
    %4 = vector.broadcast %cst_5 : f32 to vector<2x1x256xf32>
    %5 = arith.cmpf ogt, %1, %4 : vector<2x1x256xf32>
    %6 = arith.andi %3, %5 : vector<2x1x256xi1>
    %7 = arith.extui %6 : vector<2x1x256xi1> to vector<2x1x256xi32>
    %8 = arith.sitofp %7 : vector<2x1x256xi32> to vector<2x1x256xf32>
    %c0_6 = arith.constant 0 : index
    %c0_7 = arith.constant 0 : index
    %c0_8 = arith.constant 0 : index
    %9 = vector.load %arg8[%c0_6, %c0_7, %c0_8] : memref<2x1x256xf32, #tpu.memory_space<vmem>>, vector<2x1x256xf32>
    tpu.vector_store %arg8[%c0_6, %c0_7, %c0_8], %8 {strides = array<i32>} : memref<2x1x256xf32, #tpu.memory_space<vmem>>, vector<2x1x256xf32>,
    %cst_9 = arith.constant 1.000000e+00 : f32
    %10 = vector.broadcast %cst_9 : f32 to vector<2x1x256xf32>
    %11 = arith.select %3, %10, %0 : vector<2x1x256xi1>, vector<2x1x256xf32>
    %cst_10 = arith.constant 1.000000e+00 : f32
    %12 = vector.broadcast %cst_10 : f32 to vector<2x1x256xf32>
    %13 = arith.select %5, %12, %1 : vector<2x1x256xi1>, vector<2x1x256xf32>
    %c0_11 = arith.constant 0 : index
    %c0_12 = arith.constant 0 : index
    %c0_13 = arith.constant 0 : index
    %14 = vector.load %arg2[%c0_11, %c0_12, %c0_13] : memref<2x4x256xf32, #tpu.memory_space<vmem>>, vector<2x4x256xf32>
    %c0_14 = arith.constant 0 : index
    %c0_15 = arith.constant 0 : index
    %c0_16 = arith.constant 0 : index
    %15 = vector.load %arg3[%c0_14, %c0_15, %c0_16] : memref<2x4x256xf32, #tpu.memory_space<vmem>>, vector<2x4x256xf32>
    %16 = arith.cmpf oge, %13, %11 : vector<2x1x256xf32>
    %17 = vector.shape_cast %16 : vector<2x1x256xi1> to vector<2x1x256xi1>
    %18 = vector.broadcast %17 : vector<2x1x256xi1> to vector<2x4x256xi1>
    %19 = arith.select %18, %14, %15 : vector<2x4x256xi1>, vector<2x4x256xf32>
    %c0_17 = arith.constant 0 : index
    %c0_18 = arith.constant 0 : index
    %c0_19 = arith.constant 0 : index
    %20 = vector.load %arg6[%c0_17, %c0_18, %c0_19] : memref<2x4x256xf32, #tpu.memory_space<vmem>>, vector<2x4x256xf32>
    tpu.vector_store %arg6[%c0_17, %c0_18, %c0_19], %19 {strides = array<i32>} : memref<2x4x256xf32, #tpu.memory_space<vmem>>, vector<2x4x256xf32>,
    %21 = arith.cmpf oge, %11, %13 : vector<2x1x256xf32>
    %22 = vector.shape_cast %21 : vector<2x1x256xi1> to vector<2x1x256xi1>
    %23 = vector.broadcast %22 : vector<2x1x256xi1> to vector<2x4x256xi1>
    %24 = arith.select %23, %15, %14 : vector<2x4x256xi1>, vector<2x4x256xf32>
    %c0_20 = arith.constant 0 : index
    %c0_21 = arith.constant 0 : index
    %c0_22 = arith.constant 0 : index
    %25 = vector.load %arg7[%c0_20, %c0_21, %c0_22] : memref<2x4x256xf32, #tpu.memory_space<vmem>>, vector<2x4x256xf32>
    tpu.vector_store %arg7[%c0_20, %c0_21, %c0_22], %24 {strides = array<i32>} : memref<2x4x256xf32, #tpu.memory_space<vmem>>, vector<2x4x256xf32>,
    return
  }
  func.func @transform_0(%arg0: i32, %arg1: i32) -> (i32, i32, i32) {
    %c0_i32 = arith.constant 0 : i32
    %c0_i32_0 = arith.constant 0 : i32
    return %arg0, %c0_i32, %arg1 : i32, i32, i32
  }
  func.func @transform_1(%arg0: i32, %arg1: i32) -> (i32, i32, i32) {
    %c0_i32 = arith.constant 0 : i32
    %c0_i32_0 = arith.constant 0 : i32
    return %arg0, %c0_i32, %arg1 : i32, i32, i32
  }
  func.func @transform_2(%arg0: i32, %arg1: i32) -> (i32, i32, i32) {
    %c0_i32 = arith.constant 0 : i32
    %c0_i32_0 = arith.constant 0 : i32
    return %arg0, %c0_i32, %arg1 : i32, i32, i32
  }
  func.func @transform_3(%arg0: i32, %arg1: i32) -> (i32, i32, i32) {
    %c0_i32 = arith.constant 0 : i32
    %c0_i32_0 = arith.constant 0 : i32
    return %arg0, %c0_i32, %arg1 : i32, i32, i32
  }
  func.func @transform_4(%arg0: i32, %arg1: i32) -> (i32, i32, i32) {
    %c0_i32 = arith.constant 0 : i32
    %c0_i32_0 = arith.constant 0 : i32
    return %arg0, %c0_i32, %arg1 : i32, i32, i32
  }
  func.func @transform_5(%arg0: i32, %arg1: i32) -> (i32, i32, i32) {
    %c0_i32 = arith.constant 0 : i32
    %c0_i32_0 = arith.constant 0 : i32
    return %arg0, %c0_i32, %arg1 : i32, i32, i32
  }
  func.func @transform_6(%arg0: i32, %arg1: i32) -> (i32, i32, i32) {
    %c0_i32 = arith.constant 0 : i32
    %c0_i32_0 = arith.constant 0 : i32
    return %arg0, %c0_i32, %arg1 : i32, i32, i32
  }
}

</mosaic_0001>

<bundles_post_ra>
// kernel: tpu_custom_call.1
= control target key start
LH: loop header
LB: loop body
LE: loop exit
PB: predicated region body
PF: predicated region fallthrough
CT: control target
= control target key end

     0   :  { %12 = vsyncpa [#allocation3], 0  ;;  %s524_s0 = inlined_call_operand.hbm [shape: f32[2,4,256], index: 0, kind: input, shape index: {}]   ;;  %s525_s1 = inlined_call_operand.hbm [shape: f32[2,4,256], index: 1, kind: input, shape index: {}]   ;;  %s526_s2 = inlined_call_operand.hbm [shape: f32[2,1,256], index: 2, kind: input, shape index: {}]   ;;  %s527_s3 = inlined_call_operand.vmem [shape: f32[2,1,256], index: 3, kind: input, shape index: {}]   ;;  %s528_s4 = inlined_call_operand.hbm [shape: f32[2,4,256], index: 4, kind: output, shape index: {0}]   ;;  %s529_s5 = inlined_call_operand.hbm [shape: f32[2,4,256], index: 5, kind: output, shape index: {1}]   ;;  %s530_s6 = inlined_call_operand.hbm [shape: f32[2,1,256], index: 6, kind: output, shape index: {2}]  }
   0x1   :  { %13 = vsyncpa [#allocation6], 0 }
   0x2   :  { %14 = vsyncpa [#allocation4], 0 }
   0x3   :  { %15 = vsyncpa [#allocation10], 0  ;;  %s374_s21 = smov [#allocation5]   ;;  %s375_s23 = smov [#allocation2]  }
   0x4   :  { %s33_s22 = sshll.u32 %s374_s21, 4  ;;  %s21_s24 = sshll.u32 %s375_s23, 4  ;;  %s34_s22 = int_to_ptr.vmem [resolvable:$true] %s33_s22  ;;  %s22_s24 = int_to_ptr.vmem [resolvable:$true] %s21_s24 }
   0x5   :  { %s254_s25 = scalar_lea.vmem %s34_s22, 256  ;;  %p259_p1 = scmp.lt.s32.totalorder %s34_s22, %s34_s22 }
   0x6   :  { %p255_p0 = scmp.ne.s32.totalorder %s34_s22, %s254_s25  ;;  %p260_p2 = scmp.lt.s32.totalorder %s254_s25, %s254_s25 }
   0x8   :  { %p261_p3 = por %p260_p2, %p259_p1 }
   0xa   :  { %p262_p4 = pnand %p261_p3, %p255_p0 }
   0xc   :  { %265 = shalt.err (!%p262_p4)
}
   0xd   :  { %s376_s26 = smov 128   ;;  %s377_s27 = smov 8  }
   0xe   :  { %39 = dma.hbm_to_vmem [thread:$0]  %s525_s1, 256, %s34_s22, [#allocation6], %s376_s26, %s376_s26, %s377_s27  }
   0xf   :  { %s274_s30 = scalar_lea.vmem %s22_s24, 256  ;;  %p279_p6 = scmp.lt.s32.totalorder %s22_s24, %s22_s24 }
  0x10   :  { %p275_p5 = scmp.ne.s32.totalorder %s22_s24, %s274_s30  ;;  %p280_p7 = scmp.lt.s32.totalorder %s274_s30, %s274_s30 }
  0x12   :  { %p281_p8 = por %p280_p7, %p279_p6 }
  0x14   :  { %p282_p9 = pnand %p281_p8, %p275_p5 }
  0x16   :  { %285 = shalt.err (!%p282_p9)
}
  0x17   :  { %27 = dma.hbm_to_vmem [thread:$0]  %s524_s0, 256, %s22_s24, [#allocation3], %s376_s26, %s376_s26, %s377_s27  }
  0x18   :  { %s378_s9 = smov [#allocation7]  }
  0x19   :  { %s45_s10 = sshll.u32 %s378_s9, 4  ;;  %s46_s10 = int_to_ptr.vmem [resolvable:$true] %s45_s10 }
  0x1a   :  { %s294_s11 = scalar_lea.vmem %s46_s10, 64  ;;  %p299_p11 = scmp.lt.s32.totalorder %s46_s10, %s46_s10 }
  0x1b   :  { %p295_p10 = scmp.ne.s32.totalorder %s46_s10, %s294_s11  ;;  %p300_p12 = scmp.lt.s32.totalorder %s294_s11, %s294_s11 }
  0x1d   :  { %p301_p13 = por %p300_p12, %p299_p11 }
  0x1f   :  { %p302_p0 = pnand %p301_p13, %p295_p10 }
  0x21   :  { %305 = shalt.err (!%p302_p0)
}
  0x22   :  { %s379_s1 = smov 32   ;;  %s380_s12 = smov 2  }
  0x23   :  { %51 = dma.hbm_to_vmem [thread:$0]  %s526_s2, 64, %s46_s10, [#allocation6], %s379_s1, %s379_s1, %s380_s12  }
  0x24   :  { %366 = dma.done.wait [#allocation3], 256  }
  0x25   :  { %367 = vsyncadd [#allocation3], 4294967040 }
  0x26   :  { %368 = dma.done.wait [#allocation6], 320  }
  0x27   :  { %369 = vsyncadd [#allocation6], 4294966976  ;;  %v77_v0 = vlaneseq  ;;  %v63_v4 = vld [vmem:[#allocation7] sm:$0x3]  ;;  %v452_v8 = vld [vmem:[#allocation5] sm:$0xff]  ;;  %v381_v18 = vmov 0  }
  0x28   :  { %v65_v5 = vld [vmem:[%s527_s3] sm:$0x3]  ;;  %vm67_vm1 = vcmp.gt.f32.partialorder %v63_v4, 0.5  ;;  %v64_v9 = vld [vmem:[#allocation7 + $0x2] sm:$0x3]  ;;  %v454_v10 = vld [vmem:[#allocation2 + $0x8] sm:$0xff]  ;;  %v123_v15 = vcombine.high %v452_v8, %v452_v8 }
  0x29   :  { %v96_v1 = vshrl.u32 %v77_v0, 7  ;;  %vm441_vm0 = vcmp.lt.s32.totalorder %v77_v0, 256  ;;  %v448_v6 = vld [vmem:[#allocation2] sm:$0xff]  ;;  %vm69_vm2 = vcmp.gt.f32.partialorder %v65_v5, 0.5  ;;  %v83_v11 = vsel %vm67_vm1, 1.0, %v63_v4  ;;  %v465_v17 = vld [vmem:[#allocation5 + $0x8] sm:$0xff] }
  0x2a   :  { %v85_v12 = vsel %vm69_vm2, 1.0, %v65_v5  ;;  %v458_v13 = vcombine.high %v448_v6, %v448_v6  ;;  %v66_v14 = vld [vmem:[%s527_s3 + $0x2] sm:$0x3]  ;;  %vm68_vm3 = vcmp.gt.f32.partialorder %v64_v9, 0.5  ;;  %vm71_vm4 = vmand %vm67_vm1, %vm69_vm2  ;;  %v118_v21 = vcombine.high %v454_v10, %v454_v10  ;;  %s383_s3 = smov [#allocation9]   ;;  %s384_s18 = smov [#allocation11]  }
  0x2b   :  { %v439_v2 = vsub.s32 0, %v96_v1  ;;  %v450_v7 = vsub.s32 1, %v96_v1  ;;  %vm141_vm5 = vcmp.ge.f32.partialorder %v83_v11, %v85_v12  ;;  %vm70_vm6 = vcmp.gt.f32.partialorder %v66_v14, 0.5  ;;  %s196_s17 = sshll.u32 %s383_s3, 4  ;;  %s208_s19 = sshll.u32 %s384_s18, 4  ;;  %s197_s17 = int_to_ptr.vmem [resolvable:$true] %s196_s17  ;;  %s209_s19 = int_to_ptr.vmem [resolvable:$true] %s208_s19 }
  0x2c   :  { %v84_v16 = vsel %vm68_vm3, 1.0, %v64_v9  ;;  %v143_v19 = vsel %vm141_vm5, 1, %v381_v18  ;;  %v86_v20 = vsel %vm70_vm6, 1.0, %v66_v14  ;;  %v382_v22 = vmov 0.0   ;;  %vm72_vm7 = vmand %vm68_vm3, %vm70_vm6  ;;  %s385_s20 = smov [#allocation8]   ;;  %s306_s22 = scalar_lea.vmem %s197_s17, 256 }
  0x2d   :  { %v228_v23 = vsel %vm71_vm4, 1.0, %v382_v22  ;;  %v148_v24 = vrot.slane %v143_v19, %v439_v2  ;;  %v152_v25 = vrot.slane %v143_v19, %v450_v7  ;;  %vm142_vm8 = vcmp.ge.f32.partialorder %v84_v16, %v86_v20  ;;  %s184_s21 = sshll.u32 %s385_s20, 4  ;;  %p307_p1 = scmp.ne.s32.totalorder %s197_s17, %s306_s22  ;;  %s499_s21 = int_to_ptr.vmem [resolvable:$true] %s184_s21 }
  0x2e   :  { %81 = vst.msk [vmem:[#allocation11] sm:$0x3] %vm441_vm0, %v228_v23  ;;  %v229_v26 = vsel %vm72_vm7, 1.0, %v382_v22  ;;  %v124_v27 = vcombine.high %v465_v17, %v465_v17  ;;  %v144_v28 = vsel %vm142_vm8, 1, %v381_v18  ;;  %vm91_vm9 = vcmp.ge.f32.partialorder %v85_v12, %v83_v11  ;;  %p311_p2 = scmp.lt.s32.totalorder %s197_s17, %s197_s17  ;;  %p312_p3 = scmp.lt.s32.totalorder %s306_s22, %s306_s22 }
  0x2f   :  { %82 = vst.msk [vmem:[#allocation11 + $0x2] sm:$0x3] %vm441_vm0, %v229_v26  ;;  %vm92_vm10 = vcmp.ge.f32.partialorder %v86_v20, %v84_v16  ;;  %vm161_vm11 = vcmp.eq.s32.totalorder %v148_v24, 1  ;;  %vm162_vm12 = vcmp.eq.s32.totalorder %v152_v25, 1  ;;  %v156_v29 = vrot.slane %v144_v28, %v439_v2 }
  0x30   :  { %v160_v30 = vrot.slane %v144_v28, %v450_v7  ;;  %v165_v31 = vsel %vm161_vm11, %v452_v8, %v448_v6  ;;  %v166_v32 = vsel %vm162_vm12, %v123_v15, %v458_v13  ;;  %v93_v33 = vsel %vm91_vm9, 1, %v381_v18  ;;  %p313_p4 = por %p312_p3, %p311_p2 }
  0x31   :  { %v94_v34 = vsel %vm92_vm10, 1, %v381_v18  ;;  %v173_v35 = vcombine.low %v165_v31, %v166_v32  ;;  %vm163_vm13 = vcmp.eq.s32.totalorder %v156_v29, 1  ;;  %v98_v36 = vrot.slane %v93_v33, %v439_v2 }
  0x32   :  { %vm164_vm14 = vcmp.eq.s32.totalorder %v160_v30, 1  ;;  %v167_v37 = vsel %vm163_vm13, %v465_v17, %v454_v10  ;;  %v102_v39 = vrot.slane %v93_v33, %v450_v7  ;;  %v106_v40 = vrot.slane %v94_v34, %v439_v2  ;;  %p314_p5 = pnand %p313_p4, %p307_p1 }
  0x33   :  { %v168_v38 = vsel %vm164_vm14, %v124_v27, %v118_v21  ;;  %177 = vst [vmem:[#allocation9] sm:$0xff] %v173_v35  ;;  %vm111_vm15 = vcmp.eq.s32.totalorder %v98_v36, 1  ;;  %v110_v42 = vrot.slane %v94_v34, %v450_v7 }
  0x34   :  { %v174_v41 = vcombine.low %v167_v37, %v168_v38  ;;  %vm112_vm0 = vcmp.eq.s32.totalorder %v102_v39, 1  ;;  %v127_v43 = vsel %vm111_vm15, %v448_v6, %v452_v8  ;;  %vm490_vm1 = vcmp.eq.s32.totalorder %v106_v40, 1 }
  0x35   :  { %v128_v45 = vsel %vm112_vm0, %v458_v13, %v123_v15  ;;  %vm114_vm2 = vcmp.eq.s32.totalorder %v110_v42, 1  ;;  %v129_v46 = vsel %vm490_vm1, %v454_v10, %v465_v17 }
  0x36   :  { %178 = vst [vmem:[#allocation9 + $0x8] sm:$0xff] %v174_v41  ;;  %v135_v47 = vcombine.low %v127_v43, %v128_v45  ;;  %v130_v48 = vsel %vm114_vm2, %v118_v21, %v124_v27 }
  0x37   :  { %317 = shalt.err (!%p314_p5)
}
  0x38   :  { %202 = dma.vmem_to_hbm [thread:$0]  %s197_s17, 256, %s529_s5, [#allocation10], %s376_s26, %s376_s26, %s377_s27   ;;  %v136_v49 = vcombine.low %v129_v46, %v130_v48 }
  0x39   :  { %s326_s25 = scalar_lea.vmem %s209_s19, 64  ;;  %p331_p7 = scmp.lt.s32.totalorder %s209_s19, %s209_s19 }
  0x3a   :  { %p327_p6 = scmp.ne.s32.totalorder %s209_s19, %s326_s25  ;;  %p332_p8 = scmp.lt.s32.totalorder %s326_s25, %s326_s25 }
  0x3c   :  { %p333_p9 = por %p332_p8, %p331_p7 }
  0x3e   :  { %p334_p10 = pnand %p333_p9, %p327_p6 }
  0x40   :  { %337 = shalt.err (!%p334_p10)
}
  0x41   :  { %214 = dma.vmem_to_hbm [thread:$0]  %s209_s19, 64, %s530_s6, [#allocation10], %s379_s1, %s379_s1, %s380_s12   ;;  %139 = vst [vmem:[#allocation8] sm:$0xff] %v135_v47  ;;  %140 = vst [vmem:[#allocation8 + $0x8] sm:$0xff] %v136_v49 }
  0x42   :  { %s346_s5 = scalar_lea.vmem %s499_s21, 256  ;;  %p351_p12 = scmp.lt.s32.totalorder %s499_s21, %s499_s21 }
  0x43   :  { %p347_p11 = scmp.ne.s32.totalorder %s499_s21, %s346_s5  ;;  %p352_p13 = scmp.lt.s32.totalorder %s346_s5, %s346_s5 }
  0x45   :  { %p353_p0 = por %p352_p13, %p351_p12 }
  0x47   :  { %p354_p1 = pnand %p353_p0, %p347_p11 }
  0x49   :  { %357 = shalt.err (!%p354_p1)
}
  0x4a   :  { %190 = dma.vmem_to_hbm [thread:$0]  %s499_s21, 256, %s528_s4, [#allocation4], %s376_s26, %s376_s26, %s377_s27  }
  0x4b   :  { %370 = dma.done.wait [#allocation4], 256  }
  0x4c   :  { %371 = vsyncadd [#allocation4], 4294967040 }
  0x4d   :  { %372 = dma.done.wait [#allocation10], 320  }
  0x4e   :  { %373 = vsyncadd [#allocation10], 4294966976 }
  0x4f   :  { %224 = vsyncpa [#allocation3], 1 }
  0x50   :  { %225 = vsyncpa [#allocation6], 1 }
  0x51   :  { %226 = vsyncpa [#allocation4], 1 }
  0x52   :  { %227 = vsyncpa [#allocation10], 1 }

</bundles_post_ra>
